<compile_context>
chip_gen: v5e
topology: v5e:2x2
jax: 0.10.0
libtpu: 0.0.40
codegen_flags: <defaults>
</compile_context>

<pallas_src>
import jax
import jax.numpy as jnp
from jax import lax
from jax.experimental import pallas as pl
from jax.experimental.pallas import tpu as pltpu

_EPS = 1e-5
_VMEM_SAFE_BYTES = 40 * 1024 * 1024   # conservative single-block bound across v5e/v6e/v7x
_PALLAS_MIN_ELEMS = 1 << 15           # below this, XLA fusion outruns pallas_call setup


def _reference_bn3d(x, gamma, beta):
    """Pure-JAX BatchNorm1d(C) training-mode reference on (N, C, L)."""
    mean = jnp.mean(x, axis=(0, 2), keepdims=True)
    var = jnp.mean((x - mean) ** 2, axis=(0, 2), keepdims=True)
    return ((x - mean) / jnp.sqrt(var + _EPS)
            * gamma.reshape(1, -1, 1) + beta.reshape(1, -1, 1))


def _bn_cm_kernel(x_ref, gamma_ref, beta_ref, o_ref):
    # x_ref / o_ref: (C, M) with M = N * L ; gamma_ref / beta_ref: (C, 1) fp32.
    x = x_ref[...]
    m = x.shape[-1]
    inv_cnt = jnp.float32(1.0 / m)

    xf = x.astype(jnp.float32)                       # no-op for fp32 inputs
    s = jnp.sum(xf, axis=-1, keepdims=True)          # (C, 1) lane reduce (XLU)
    ss = jnp.sum(xf * xf, axis=-1, keepdims=True)    # (C, 1)
    mean = s * inv_cnt
    var = jnp.maximum(ss * inv_cnt - mean * mean, 0.0)   # biased var, clamped
    inv_std = lax.rsqrt(var + _EPS)                  # EUP slot, ~free

    # Fold affine into per-channel scale/shift: out = x * scale + shift.
    scale = gamma_ref[...] * inv_std                 # (C, 1)
    shift = beta_ref[...] - mean * scale             # (C, 1)

    if x.dtype == jnp.bfloat16:
        # bf16 VPUs on v6e/v7x: keep the elementwise affine in bf16.
        o_ref[...] = (x * scale.astype(x.dtype)
                      + shift.astype(x.dtype)).astype(o_ref.dtype)
    else:
        o_ref[...] = (xf * scale + shift).astype(o_ref.dtype)


def batch_norm_3d_pallas(x, gamma, beta):
    """x: (N, C, L). Training-mode BatchNorm1d(C) via a lane-dense Pallas kernel."""
    n, c, l = x.shape
    m = n * l
    # Layout plumbing (XLA side): channel -> sublanes, batch*length -> lanes.
    x_cm = jnp.transpose(x, (1, 0, 2)).reshape(c, m)
    gamma_c1 = gamma.astype(jnp.float32).reshape(c, 1)
    beta_c1 = beta.astype(jnp.float32).reshape(c, 1)

    # Size the scoped VMEM limit to the actual block footprint (in + out,
    # possible double buffers, fp32 temps) plus headroom.
    x_bytes = c * m * jnp.dtype(x.dtype).itemsize
    f32_bytes = c * m * 4
    needed = 4 * x_bytes + 2 * f32_bytes + (1 << 20)
    vmem_limit = int(min(max(needed, 16 * 1024 * 1024), 60 * 1024 * 1024))

    out_cm = pl.pallas_call(
        _bn_cm_kernel,
        out_shape=jax.ShapeDtypeStruct((c, m), x.dtype),
        in_specs=[
            pl.BlockSpec((c, m), lambda: (0, 0)),
            pl.BlockSpec((c, 1), lambda: (0, 0)),
            pl.BlockSpec((c, 1), lambda: (0, 0)),
        ],
        out_specs=pl.BlockSpec((c, m), lambda: (0, 0)),
        compiler_params=pltpu.CompilerParams(vmem_limit_bytes=vmem_limit),
    )(x_cm, gamma_c1, beta_c1)
    return jnp.transpose(out_cm.reshape(c, n, l), (1, 0, 2))


def batch_norm_3d(x, gamma, beta, *, force_pallas=False):
    """Dispatch: Pallas for sizable slabs that fit one VMEM block, else XLA."""
    n, c, l = x.shape
    elems = n * c * l
    slab_bytes = 4 * elems * max(jnp.dtype(x.dtype).itemsize, 4)
    too_small = (not force_pallas) and elems < _PALLAS_MIN_ELEMS
    too_big = slab_bytes > _VMEM_SAFE_BYTES
    if too_small or too_big:
        # TODO(synk): for slabs exceeding one safe VMEM block, tile the N*L
        # axis with a grid (stats-accumulation pass + normalize pass) instead
        # of this pure-JAX fallback.
        return _reference_bn3d(x, gamma, beta).astype(x.dtype)
    return batch_norm_3d_pallas(x, gamma, beta)


class BatchNormalizer3DPallas:
    """JAX/Pallas port of BatchNormalizer3D (IEncoder subclass), forward only."""

    def __init__(self, size_in, n_history, key=None, force_pallas=False):
        self.size_in = size_in
        self.n_history = n_history
        self.size_out = size_in * n_history
        self.n_features = 1
        self.force_pallas = force_pallas
        # nn.BatchNorm1d(n_history) default init: weight=1, bias=0,
        # running_mean=0, running_var=1.  Deterministic in-script init.
        self.gamma = jnp.ones((n_history,), jnp.float32)
        self.beta = jnp.zeros((n_history,), jnp.float32)
        self.running_mean = jnp.zeros((n_history,), jnp.float32)
        self.running_var = jnp.ones((n_history,), jnp.float32)

    def forward(self, states, memory):
        x = states.reshape(-1, self.n_history, self.size_in)
        if x.shape[0] == 1:
            # PyTorch module switches to eval() for batch==1: running stats.
            # TODO(synk): running-stat eval path and running-stat *updates*
            # during training-mode forward are kept in plain JAX (not hot).
            inv = lax.rsqrt(self.running_var + _EPS).reshape(1, -1, 1)
            mu = self.running_mean.reshape(1, -1, 1)
            g = self.gamma.reshape(1, -1, 1)
            b = self.beta.reshape(1, -1, 1)
            out = (x - mu) * inv * g + b
        else:
            out = batch_norm_3d(x, self.gamma, self.beta,
                                force_pallas=self.force_pallas)
        return out.reshape(-1, self.size_out), memory

    def extract_features(self, states):
        assert states.shape[1] == self.size_out
        feats = jnp.zeros((states.reshape(-1, self.size_out).shape[0],
                           self.n_features), states.dtype)
        return self.forward(states, feats)


if __name__ == "__main__":
    key = jax.random.PRNGKey(0)
    k1, k2 = jax.random.split(key)

    # Small shapes consistent with the module: batch=2, n_history=4, size_in=16.
    batch, n_history, size_in = 2, 4, 16
    size_out = n_history * size_in
    states = jax.random.normal(k1, (batch, size_out), jnp.float32)

    module = BatchNormalizer3DPallas(size_in=size_in, n_history=n_history,
                                     key=k2, force_pallas=True)
    out, memory = module.extract_features(states)
    out = jax.block_until_ready(out)

    ref = _reference_bn3d(
        states.reshape(-1, n_history, size_in), module.gamma, module.beta
    ).reshape(-1, size_out)
    assert out.shape == (batch, size_out)
    assert memory.shape == (batch, 1)
    assert jnp.allclose(out, ref, atol=1e-5, rtol=1e-5)

    # Lane-dense-sized check: per-channel lane extent N*L = 64*128 = 8192.
    b2, c2, l2 = 64, 8, 128
    states2 = jax.random.normal(k2, (b2, c2 * l2), jnp.float32)
    module2 = BatchNormalizer3DPallas(size_in=l2, n_history=c2, key=k2,
                                      force_pallas=True)
    out2, _ = module2.extract_features(states2)
    out2 = jax.block_until_ready(out2)
    ref2 = _reference_bn3d(
        states2.reshape(-1, c2, l2), module2.gamma, module2.beta
    ).reshape(-1, c2 * l2)
    assert jnp.allclose(out2, ref2, atol=1e-4, rtol=1e-4)

    print("KERNEL_OK")
</pallas_src>

<mosaic_0001>
module attributes {stable_mosaic.version = 11 : i64} {
  func.func @_bn_cm_kernel(%arg0: memref<4x32xf32, #tpu.memory_space<vmem>>, %arg1: memref<4x1xf32, #tpu.memory_space<vmem>>, %arg2: memref<4x1xf32, #tpu.memory_space<vmem>>, %arg3: memref<4x32xf32, #tpu.memory_space<vmem>>) attributes {dimension_semantics = [], scalar_prefetch = 0 : i64, scratch_operands = 0 : i64, tpu.core_type = #tpu.core_type<tc>} {
    %c0 = arith.constant 0 : index
    %c0_0 = arith.constant 0 : index
    %0 = vector.load %arg0[%c0, %c0_0] : memref<4x32xf32, #tpu.memory_space<vmem>>, vector<4x32xf32>
    %cst = arith.constant dense<0.000000e+00> : vector<4xf32>
    %1 = vector.multi_reduction <add>, %0, %cst [1] : vector<4x32xf32> to vector<4xf32>
    %2 = vector.shape_cast %1 : vector<4xf32> to vector<4x1xf32>
    %3 = arith.mulf %0, %0 : vector<4x32xf32>
    %cst_1 = arith.constant dense<0.000000e+00> : vector<4xf32>
    %4 = vector.multi_reduction <add>, %3, %cst_1 [1] : vector<4x32xf32> to vector<4xf32>
    %5 = vector.shape_cast %4 : vector<4xf32> to vector<4x1xf32>
    %cst_2 = arith.constant 3.125000e-02 : f32
    %6 = vector.broadcast %cst_2 : f32 to vector<4x1xf32>
    %7 = arith.mulf %2, %6 : vector<4x1xf32>
    %cst_3 = arith.constant 3.125000e-02 : f32
    %8 = vector.broadcast %cst_3 : f32 to vector<4x1xf32>
    %9 = arith.mulf %5, %8 : vector<4x1xf32>
    %10 = arith.mulf %7, %7 : vector<4x1xf32>
    %11 = arith.subf %9, %10 : vector<4x1xf32>
    %cst_4 = arith.constant 0.000000e+00 : f32
    %12 = vector.broadcast %cst_4 : f32 to vector<4x1xf32>
    %13 = arith.maximumf %11, %12 : vector<4x1xf32>
    %cst_5 = arith.constant 9.99999974E-6 : f32
    %14 = vector.broadcast %cst_5 : f32 to vector<4x1xf32>
    %15 = arith.addf %13, %14 : vector<4x1xf32>
    %16 = math.rsqrt %15 : vector<4x1xf32>
    %c0_6 = arith.constant 0 : index
    %c0_7 = arith.constant 0 : index
    %17 = vector.load %arg1[%c0_6, %c0_7] : memref<4x1xf32, #tpu.memory_space<vmem>>, vector<4x1xf32>
    %18 = arith.mulf %17, %16 : vector<4x1xf32>
    %c0_8 = arith.constant 0 : index
    %c0_9 = arith.constant 0 : index
    %19 = vector.load %arg2[%c0_8, %c0_9] : memref<4x1xf32, #tpu.memory_space<vmem>>, vector<4x1xf32>
    %20 = arith.mulf %7, %18 : vector<4x1xf32>
    %21 = arith.subf %19, %20 : vector<4x1xf32>
    %22 = vector.broadcast %18 : vector<4x1xf32> to vector<4x32xf32>
    %23 = arith.mulf %0, %22 : vector<4x32xf32>
    %24 = vector.broadcast %21 : vector<4x1xf32> to vector<4x32xf32>
    %25 = arith.addf %23, %24 : vector<4x32xf32>
    %c0_10 = arith.constant 0 : index
    %c0_11 = arith.constant 0 : index
    %26 = vector.load %arg3[%c0_10, %c0_11] : memref<4x32xf32, #tpu.memory_space<vmem>>, vector<4x32xf32>
    tpu.vector_store %arg3[%c0_10, %c0_11], %25 {strides = array<i32>} : memref<4x32xf32, #tpu.memory_space<vmem>>, vector<4x32xf32>,
    return
  }
}

</mosaic_0001>

<bundles_post_ra>
// kernel: tpu_custom_call.1
= control target key start
LH: loop header
LB: loop body
LE: loop exit
PB: predicated region body
PF: predicated region fallthrough
CT: control target
= control target key end

     0   :  { %vm16_vm0 = vcmask 257024   ;;  %s143_s0 = inlined_call_operand.vmem [shape: f32[4,32], index: 0, kind: input, shape index: {}]   ;;  %s144_s1 = inlined_call_operand.vmem [shape: f32[4,1], index: 1, kind: input, shape index: {}]   ;;  %s145_s2 = inlined_call_operand.vmem [shape: f32[4,1], index: 2, kind: input, shape index: {}]   ;;  %s146_s3 = inlined_call_operand.hbm [shape: f32[4,32], index: 3, kind: output, shape index: {}]  }
   0x1   :  { %v15_v0 = vld [vmem:[%s143_s0] sm:$0xf] }
   0x2   :  { %8 = vsyncpa [#allocation3], 0  ;;  %v17_v1 = vsel %vm16_vm0, %v15_v0, 0.0  ;;  %v20_v2 = vmul.f32 %v15_v0, %v15_v0  ;;  %v106_v4 = vmov 0   ;;  %v40_v19 = vld [vmem:[%s144_s1] sm:$0xf] }
   0x3   :  { %18 = vadd.xlane.f32.xlu0 %v17_v1  ;;  %76 = vset.pattern.permute.xlu1 %v106_v4  ;;  %v42_v23 = vld [vmem:[%s145_s2] sm:$0xf]  ;;  %s107_s17 = smov [#allocation2]   ;;  %s65_s21 = sshll.u32 %s146_s3, 4  ;;  %s66_s21 = int_to_ptr.hbm [resolvable:$true] %s65_s21 }
   0x4   :  { %v21_v3 = vsel %vm16_vm0, %v20_v2, 0.0  ;;  %77 = vset.pattern.permute.xlu0 %v106_v4  ;;  %s63_s18 = sshll.u32 %s107_s17, 4  ;;  %s64_s18 = int_to_ptr.vmem [resolvable:$true] %s63_s18 }
   0xb   :  { %22 = vadd.xlane.f32.xlu0 %v21_v3 }
  0x76   :  { %v19_v5 = vpop.xlane.xlu0 %18 }
  0x77   :  { %v24_v6 = vmul.f32 0.03125, %v19_v5 }
  0x79   :  { %v26_v8 = vmul.f32 %v24_v6, %v24_v6 }
  0x7e   :  { %v23_v7 = vpop.xlane.xlu0 %22 }
  0x7f   :  { %v25_v9 = vmul.f32 0.03125, %v23_v7 }
  0x81   :  { %v27_v10 = vsub.f32 %v25_v9, %v26_v8 }
  0x83   :  { %v28_v11 = vmax.f32 %v27_v10, 0.0 }
  0x85   :  { %v29_v12 = vadd.f32 1e-05, %v28_v11 }
  0x87   :  { %78 = vrsqrt.f32 %v29_v12  ;;  %vm36_vm2 = vweird.f32 %v29_v12 }
  0x8d   :  { %v79_v13 = vpop.eup %78 }
  0x8e   :  { %v31_v14 = vmul.f32 %v79_v13, %v29_v12  ;;  %vm37_vm1 = vweird.f32 %v79_v13 }
  0x8f   :  { %vm38_vm3 = vmor %vm36_vm2, %vm37_vm1 }
  0x90   :  { %v32_v15 = vmul.f32 %v79_v13, %v31_v14 }
  0x92   :  { %v33_v16 = vmul.f32 0.5, %v32_v15 }
  0x94   :  { %v34_v17 = vsub.f32 1.5, %v33_v16 }
  0x96   :  { %v35_v18 = vmul.f32 %v79_v13, %v34_v17 }
  0x98   :  { %v39_v20 = vsel %vm38_vm3, %v79_v13, %v35_v18 }
  0x99   :  { %v41_v21 = vmul.f32 %v40_v19, %v39_v20 }
  0x9b   :  { %47 = vperm.xlu1 %76, %v41_v21   ;;  %v43_v22 = vmul.f32 %v41_v21, %v24_v6 }
  0x9d   :  { %v44_v24 = vsub.f32 %v42_v23, %v43_v22 }
  0xa3   :  { %53 = vperm.xlu1 %76, %v44_v24  }
 0x10d   :  { %v48_v25 = vpop.permute.xlu1 %47 }
 0x10e   :  { %v50_v26 = vmul.f32 %v48_v25, %v15_v0 }
 0x115   :  { %v54_v27 = vpop.permute.xlu1 %53 }
 0x116   :  { %v56_v28 = vadd.f32 %v54_v27, %v50_v26 }
 0x118   :  { %57 = vst.msk [vmem:[#allocation2] sm:$0xf] %vm16_vm0, %v56_v28 }
 0x119   :  { %68 = dma.vmem_to_hbm [thread:$0]  %s64_s18, 64, %s66_s21, [#allocation3]  }
 0x11a   :  { %104 = dma.done.wait [#allocation3], 64  }
 0x11b   :  { %105 = vsyncadd [#allocation3], 4294967232 }
 0x11c   :  { %73 = vsyncpa [#allocation3], 1 }

</bundles_post_ra>
